<compile_context>
chip_gen: v5e
topology: v5e:2x2
jax: 0.10.0
libtpu: 0.0.40
codegen_flags: <defaults>
</compile_context>

<pallas_src>
import numpy as np
import jax
import jax.numpy as jnp
from jax.experimental import pallas as pl
from jax.experimental.pallas import tpu as pltpu


def _round_up(v, m):
    return ((v + m - 1) // m) * m


# ----------------------------- Pallas kernels --------------------------------

def stats_kernel(plo_ref, p1_ref, w1_ref, w23_ref, out_ref):
    """Pass 1: per-tile per-channel sum / sum-of-squares of the bias-free
    pre-BN outputs of branches 1..3.

    plo_ref : (Kp, TL)          bf16  shared low-res 3x3 patches
    p1_ref  : (1, Kp, TL)       bf16  bilinear-branch patches (this parity)
    w1_ref  : (Coutp, Kp)       bf16  branch-1 conv weights (resident)
    w23_ref : (4, 2*Coutp, Kp)  bf16  stacked branch-2/3 parity weights (resident)
    out_ref : (1, 1, 8, Coutp)  f32   lane-dense stats (s1,q1,s2,q2,s3,q3,0,0)
    """
    par = pl.program_id(1)
    f32 = jnp.float32
    plo = plo_ref[...]
    p1 = p1_ref[0]
    y1 = jnp.dot(w1_ref[...], p1, preferred_element_type=f32)      # (Coutp, TL)
    y23 = jnp.dot(w23_ref[par], plo, preferred_element_type=f32)   # (2*Coutp, TL)
    cp = y1.shape[0]
    y2, y3 = y23[:cp], y23[cp:]

    def _sums(y):
        return (jnp.sum(y, axis=-1, keepdims=True),
                jnp.sum(y * y, axis=-1, keepdims=True))

    s1, q1 = _sums(y1)
    s2, q2 = _sums(y2)
    s3, q3 = _sums(y3)
    z = jnp.zeros_like(s1)
    stats = jnp.concatenate([s1, q1, s2, q2, s3, q3, z, z], axis=-1)  # (Coutp, 8)
    out_ref[...] = jnp.transpose(stats)[None, None]                   # (1,1,8,Coutp)


def mix_kernel(plo_ref, p1_ref, wsh_ref, w1s_ref, c_ref, out_ref):
    """Pass 2: BN affine + softmax arch weights folded into the weights, so the
    full 4-branch mixture is two matmuls + a per-channel f32 constant.

    plo_ref : (Kp, TL)        bf16
    p1_ref  : (1, Kp, TL)     bf16
    wsh_ref : (4, Coutp, Kp)  bf16  fused branch-0/2/3 weights (resident)
    w1s_ref : (Coutp, Kp)     bf16  BN-scaled branch-1 weights (resident)
    c_ref   : (4, Coutp, 1)   f32   per-parity per-channel constant (resident)
    out_ref : (1, Coutp, TL)  out dtype (bf16 by default)
    """
    par = pl.program_id(1)
    f32 = jnp.float32
    y = jnp.dot(wsh_ref[par], plo_ref[...], preferred_element_type=f32)   # 0+2+3
    y = y + jnp.dot(w1s_ref[...], p1_ref[0], preferred_element_type=f32)  # 1
    # Constant kept in f32 (not folded into the bf16 weights) for precision.
    out_ref[...] = (y + c_ref[par]).astype(out_ref.dtype)[None]


# ----------------------------- glue helpers ----------------------------------

def bilinear_matrix(H):
    """(2H, H) interpolation matrix matching torch Upsample(bilinear, align_corners=False)."""
    out = 2 * H
    U = np.zeros((out, H), dtype=np.float32)
    for o in range(out):
        src = (o + 0.5) / 2.0 - 0.5
        src = max(src, 0.0)
        i0 = min(int(np.floor(src)), H - 1)
        frac = src - i0
        i1 = min(i0 + 1, H - 1)
        U[o, i0] += 1.0 - frac
        U[o, i1] += frac
    return jnp.asarray(U)


def _low_res_patches(x):
    """x: (N, C, H, W) -> transposed low-res 3x3 im2col patches (9*C, N*H*W);
    rows ordered (ty, tx, ci), columns ordered (n, y, x)."""
    N, C, H, W = x.shape
    xp = jnp.pad(x, ((0, 0), (0, 0), (1, 1), (1, 1)))
    taps = [xp[:, :, ty:ty + H, tx:tx + W] for ty in range(3) for tx in range(3)]
    t = jnp.stack(taps, axis=0)                               # (9, N, C, H, W)
    return jnp.transpose(t, (0, 2, 1, 3, 4)).reshape(9 * C, N * H * W)


def _bilinear_parity_patches(x):
    """Per-parity transposed 3x3 im2col patches of the bilinear-x2-upsampled,
    zero-padded image: (4, 9*C, N*H*W); parity k = 2*dy + dx."""
    N, C, H, W = x.shape
    Uh, Uw = bilinear_matrix(H), bilinear_matrix(W)
    x1 = jnp.einsum('oh,nchw,pw->ncop', Uh, x, Uw)            # (N, C, 2H, 2W)
    x1p = jnp.pad(x1, ((0, 0), (0, 0), (1, 1), (1, 1)))
    outs = []
    for dy in range(2):
        for dx in range(2):
            taps = [x1p[:, :, dy + ty:dy + ty + 2 * H:2, dx + tx:dx + tx + 2 * W:2]
                    for ty in range(3) for tx in range(3)]    # each (N, C, H, W)
            t = jnp.stack(taps, axis=0)
            outs.append(jnp.transpose(t, (0, 2, 1, 3, 4)).reshape(9 * C, N * H * W))
    return jnp.stack(outs, axis=0)


# Sub-pixel decomposition selectors: map (output parity d, low-res tap t) -> kernel index.
_DECONV_SEL = np.zeros((2, 3, 4), np.float32)   # ConvTranspose2d(k=4, s=2, p=1)
_DECONV_SEL[0, 0, 3] = 1.0
_DECONV_SEL[0, 1, 1] = 1.0
_DECONV_SEL[1, 1, 2] = 1.0
_DECONV_SEL[1, 2, 0] = 1.0
_NEAREST_SEL = np.zeros((2, 3, 3), np.float32)  # nearest-x2 then 3x3 conv (pad 1)
_NEAREST_SEL[0, 0, 0] = 1.0
_NEAREST_SEL[0, 1, 1] = 1.0
_NEAREST_SEL[0, 1, 2] = 1.0
_NEAREST_SEL[1, 1, 0] = 1.0
_NEAREST_SEL[1, 1, 1] = 1.0
_NEAREST_SEL[1, 2, 2] = 1.0


def _deconv_parity_weights(wt0):
    """wt0: (Cin, Cout, 4, 4) -> (4, Cout, 9*Cin) parity weights over the shared
    low-res 3x3 patches (2x2 active taps zero-embedded in the 3x3 window)."""
    S = jnp.asarray(_DECONV_SEL)
    w = jnp.einsum('dta,eub,ioab->deotui', S, S, wt0)   # (2,2,Cout,3,3,Cin)
    Ci, Co = wt0.shape[0], wt0.shape[1]
    return w.reshape(4, Co, 9 * Ci)


def _nearest_parity_weights(w2):
    """w2: (Cout, Cin, 3, 3) -> (4, Cout, 9*Cin): exact low-res decomposition of
    nearest-x2 upsample followed by the padded 3x3 conv."""
    S = jnp.asarray(_NEAREST_SEL)
    w = jnp.einsum('dta,eub,oiab->deotui', S, S, w2)
    Co, Ci = w2.shape[0], w2.shape[1]
    return w.reshape(4, Co, 9 * Ci)


def _shuffle_parity_weights(w3, cout):
    """w3: (4*Cout, Cin, 3, 3) -> (4, Cout, 9*Cin); PixelShuffle channel = 4*co + (2*dy+dx)."""
    Ci = w3.shape[1]
    w = w3.reshape(cout, 4, Ci, 3, 3)                   # (co, k, ci, ky, kx)
    return jnp.transpose(w, (1, 0, 3, 4, 2)).reshape(4, cout, 9 * Ci)


def _conv_weight_t(w1):
    """(Cout, Cin, 3, 3) -> (Cout, 9*Cin), columns ordered (ty, tx, ci)."""
    Co, Ci = w1.shape[0], w1.shape[1]
    return jnp.transpose(w1, (0, 2, 3, 1)).reshape(Co, 9 * Ci)


# ----------------------------- forward wrapper --------------------------------

def mixed_upsampling_forward(params, x, tile=1024, out_dtype=jnp.bfloat16,
                             vmem_budget_bytes=48 * 1024 * 1024):
    N, Cin, H, W = x.shape
    Cout = params['b1'].shape[0]
    L = N * H * W                    # low-res positions per parity
    M = 4 * L                        # total output pixels (= N * 2H * 2W)
    K = 9 * Cin
    Coutp = _round_up(Cout, 8)       # f32/bf16 sublane-friendly channel count
    Kp = _round_up(K, 16)            # bf16 sublane multiple for the contraction dim
    bf16 = jnp.bfloat16
    out_itemsize = np.dtype(out_dtype).itemsize

    # ---- row tile: as large as possible (per-grid-step overhead ~0.35us), but
    #      keep the double-buffered VMEM footprint under the v7x-safe budget.
    TL = max(128, (min(max(tile, 128), _round_up(L, 128)) // 128) * 128)

    def vmem_need(tl):
        dbuf = 2
        patches = dbuf * 2 * Kp * tl * 2                     # plo + p1 (bf16)
        weights = dbuf * (4 * 2 * Coutp * Kp * 2             # w23 (stats pass)
                          + 4 * Coutp * Kp * 2               # wsh (mix pass)
                          + 2 * Coutp * Kp * 2               # w1t + w1s
                          + 4 * Coutp * 4)                   # const (f32)
        outs = dbuf * (Coutp * tl * out_itemsize + 8 * Coutp * 4)
        return patches + weights + outs

    while TL > 128 and vmem_need(TL) > vmem_budget_bytes:
        TL -= 128
    T = pl.cdiv(L, TL)
    Lp = T * TL
    need = vmem_need(TL)
    vmem_limit = int(max(min(2 * need, vmem_budget_bytes),
                         need + (2 << 20), 32 * 1024 * 1024))

    # ---- patch matrices (transposed: taps on sublanes, pixels on lanes) ----
    plo = _low_res_patches(x)                                  # (K, L) shared by 0/2/3
    p1 = _bilinear_parity_patches(x)                           # (4, K, L) bilinear branch
    plo = jnp.pad(plo, ((0, Kp - K), (0, Lp - L))).astype(bf16)
    p1 = jnp.pad(p1, ((0, 0), (0, Kp - K), (0, Lp - L))).astype(bf16)

    # ---- parity weight matrices, zero-padded to (Coutp, Kp) ----
    def pad_w(w):
        pads = [(0, 0)] * (w.ndim - 2) + [(0, Coutp - w.shape[-2]),
                                          (0, Kp - w.shape[-1])]
        return jnp.pad(w, pads)

    w0p = pad_w(_deconv_parity_weights(params['wt0']))         # (4, Coutp, Kp)
    w1t = pad_w(_conv_weight_t(params['w1']))                  # (Coutp, Kp)
    w2p = pad_w(_nearest_parity_weights(params['w2']))         # (4, Coutp, Kp)
    w3p = pad_w(_shuffle_parity_weights(params['w3'], Cout))   # (4, Coutp, Kp)
    w23 = jnp.concatenate([w2p, w3p], axis=1)                  # (4, 2*Coutp, Kp)
    b3p = params['b3'].reshape(Cout, 4).T                      # (4, Cout) parity bias

    aw = jax.nn.softmax(params['alpha'])                       # 4-way softmax (glue)

    grid = (T, 4)                          # row tiles outer -> shared plo stays resident
    cparams = pltpu.CompilerParams(
        dimension_semantics=("parallel", "parallel"),          # megacore split on v7x
        vmem_limit_bytes=vmem_limit)

    # ---- pass 1: global BN statistics under tiling ----
    stats = pl.pallas_call(
        stats_kernel,
        out_shape=jax.ShapeDtypeStruct((4, T, 8, Coutp), jnp.float32),
        grid_spec=pltpu.PrefetchScalarGridSpec(
            num_scalar_prefetch=0,
            grid=grid,
            in_specs=[
                pl.BlockSpec((Kp, TL), lambda j, k: (0, j)),          # shared patches
                pl.BlockSpec((1, Kp, TL), lambda j, k: (k, 0, j)),    # bilinear patches
                pl.BlockSpec((Coutp, Kp), lambda j, k: (0, 0)),       # w1 (resident)
                pl.BlockSpec((4, 2 * Coutp, Kp), lambda j, k: (0, 0, 0)),  # w2||w3 (resident)
            ],
            out_specs=pl.BlockSpec((1, 1, 8, Coutp), lambda j, k: (k, j, 0, 0)),
        ),
        compiler_params=cparams,
    )(plo, p1, w1t.astype(bf16), w23.astype(bf16))

    per_parity = jnp.sum(stats, axis=1)[..., :Cout]            # (4, 8, Cout) tile-reduce

    def bn_fold(s_raw, q_raw, bias_k, gamma, beta, a_i):
        # s_raw / q_raw / bias_k: (4, Cout).  Raw sums exclude the conv bias
        # (padded zero rows/cols contribute nothing), so the bias is added
        # analytically for exactly L real pixels per parity.
        tot_s = jnp.sum(s_raw + L * bias_k, axis=0)
        tot_q = jnp.sum(q_raw + 2.0 * bias_k * s_raw + L * bias_k * bias_k, axis=0)
        mean = tot_s / M
        var = jnp.maximum(tot_q / M - mean * mean, 0.0)         # biased var (train BN)
        scale = a_i * gamma * jax.lax.rsqrt(var + 1e-5)         # (Cout,)
        const_k = scale[None, :] * (bias_k - mean[None, :]) + a_i * beta[None, :]
        return scale, const_k                                    # (Cout,), (4, Cout)

    b1k = jnp.broadcast_to(params['b1'][None, :], (4, Cout))
    b2k = jnp.broadcast_to(params['b2'][None, :], (4, Cout))
    s1, c1 = bn_fold(per_parity[:, 0], per_parity[:, 1], b1k,
                     params['g1'], params['be1'], aw[1])
    s2, c2 = bn_fold(per_parity[:, 2], per_parity[:, 3], b2k,
                     params['g2'], params['be2'], aw[2])
    s3, c3 = bn_fold(per_parity[:, 4], per_parity[:, 5], b3p,
                     params['g3'], params['be3'], aw[3])

    padc = lambda v: jnp.pad(v, (0, Coutp - Cout))
    s1p, s2p, s3p = padc(s1), padc(s2), padc(s3)

    # Fold softmax + BN affine into the weights; branches 0/2/3 share the
    # low-res patches so their weight matrices collapse into one fused matrix.
    wsh = aw[0] * w0p + s2p[None, :, None] * w2p + s3p[None, :, None] * w3p
    w1s = s1p[:, None] * w1t
    const = aw[0] * params['bt0'][None, :] + c1 + c2 + c3        # (4, Cout)
    const = jnp.pad(const, ((0, 0), (0, Coutp - Cout)))          # (4, Coutp)

    # ---- pass 2: fused mixed output (f32 accumulation, bf16 store) ----
    out_t = pl.pallas_call(
        mix_kernel,
        out_shape=jax.ShapeDtypeStruct((4, Coutp, Lp), out_dtype),
        grid_spec=pltpu.PrefetchScalarGridSpec(
            num_scalar_prefetch=0,
            grid=grid,
            in_specs=[
                pl.BlockSpec((Kp, TL), lambda j, k: (0, j)),
                pl.BlockSpec((1, Kp, TL), lambda j, k: (k, 0, j)),
                pl.BlockSpec((4, Coutp, Kp), lambda j, k: (0, 0, 0)),   # resident
                pl.BlockSpec((Coutp, Kp), lambda j, k: (0, 0)),         # resident
                pl.BlockSpec((4, Coutp, 1), lambda j, k: (0, 0, 0)),    # resident
            ],
            out_specs=pl.BlockSpec((1, Coutp, TL), lambda j, k: (k, 0, j)),
        ),
        compiler_params=cparams,
    )(plo, p1, wsh.astype(bf16), w1s.astype(bf16),
      const.reshape(4, Coutp, 1).astype(jnp.float32))

    # (parity, Cout, L) -> NCHW (N, Cout, 2H, 2W).
    # TODO(synk): if the consumer can accept the (parity, Cout, pixel) layout,
    # drop this de-interleave (a full extra HBM round trip in XLA); a
    # lane-dense parity-strided store is not expressible with BlockSpec, so it
    # stays in glue (now on bf16: half the bytes of v2).
    out = out_t[:, :Cout, :L].reshape(2, 2, Cout, N, H, W)
    out = out.transpose(3, 2, 4, 0, 5, 1).reshape(N, Cout, 2 * H, 2 * W)
    return out


# ----------------------------- reference (pure JAX) ---------------------------

def torch_like_reference(params, x):
    N, Cin, H, W = x.shape
    Cout = params['b1'].shape[0]

    def bn(y, g, b):
        m = y.mean(axis=(0, 2, 3), keepdims=True)
        v = ((y - m) ** 2).mean(axis=(0, 2, 3), keepdims=True)
        return (y - m) * jax.lax.rsqrt(v + 1e-5) * g[None, :, None, None] + b[None, :, None, None]

    dn = lambda xs, ws: jax.lax.conv_dimension_numbers(xs, ws, ('NCHW', 'OIHW', 'NCHW'))

    w0 = jnp.transpose(params['wt0'], (1, 0, 2, 3))[:, :, ::-1, ::-1]
    y0 = jax.lax.conv_general_dilated(x, w0, (1, 1), ((2, 2), (2, 2)), lhs_dilation=(2, 2),
                                      dimension_numbers=dn(x.shape, w0.shape))
    y0 = y0 + params['bt0'][None, :, None, None]

    U_h, U_w = bilinear_matrix(H), bilinear_matrix(W)
    x1 = jnp.einsum('oh,nchw,pw->ncop', U_h, x, U_w)
    y1 = jax.lax.conv_general_dilated(x1, params['w1'], (1, 1), ((1, 1), (1, 1)),
                                      dimension_numbers=dn(x1.shape, params['w1'].shape))
    y1 = bn(y1 + params['b1'][None, :, None, None], params['g1'], params['be1'])

    x2 = jnp.repeat(jnp.repeat(x, 2, axis=2), 2, axis=3)
    y2 = jax.lax.conv_general_dilated(x2, params['w2'], (1, 1), ((1, 1), (1, 1)),
                                      dimension_numbers=dn(x2.shape, params['w2'].shape))
    y2 = bn(y2 + params['b2'][None, :, None, None], params['g2'], params['be2'])

    y3 = jax.lax.conv_general_dilated(x, params['w3'], (1, 1), ((1, 1), (1, 1)),
                                      dimension_numbers=dn(x.shape, params['w3'].shape))
    y3 = y3 + params['b3'][None, :, None, None]
    y3 = y3.reshape(N, Cout, 2, 2, H, W).transpose(0, 1, 4, 2, 5, 3).reshape(N, Cout, 2 * H, 2 * W)
    y3 = bn(y3, params['g3'], params['be3'])

    aw = jax.nn.softmax(params['alpha'])
    return aw[0] * y0 + aw[1] * y1 + aw[2] * y2 + aw[3] * y3


# ----------------------------- params & main ----------------------------------

def init_params(key, cin, cout):
    ks = jax.random.split(key, 16)
    n = lambda k, shape, s=0.1: s * jax.random.normal(k, shape, jnp.float32)
    return dict(
        wt0=n(ks[0], (cin, cout, 4, 4)), bt0=n(ks[1], (cout,)),            # ConvTranspose2d
        w1=n(ks[2], (cout, cin, 3, 3)), b1=n(ks[3], (cout,)),
        g1=1.0 + n(ks[4], (cout,)), be1=n(ks[5], (cout,)),
        w2=n(ks[6], (cout, cin, 3, 3)), b2=n(ks[7], (cout,)),
        g2=1.0 + n(ks[8], (cout,)), be2=n(ks[9], (cout,)),
        w3=n(ks[10], (cout * 4, cin, 3, 3)), b3=n(ks[11], (cout * 4,)),
        g3=1.0 + n(ks[12], (cout,)), be3=n(ks[13], (cout,)),
        alpha=jax.random.normal(ks[14], (4,), jnp.float32),
    )


if __name__ == "__main__":
    key = jax.random.PRNGKey(0)
    kx, kp = jax.random.split(key)
    N, Cin, Cout, H, W = 2, 4, 4, 16, 16
    x = jax.random.normal(kx, (N, Cin, H, W), jnp.float32)
    params = init_params(kp, Cin, Cout)

    out = jax.block_until_ready(mixed_upsampling_forward(params, x))
    assert out.shape == (N, Cout, 2 * H, 2 * W)

    ref = jax.block_until_ready(torch_like_reference(params, x))
    # bf16 patch/weight matrices + bf16 output store (f32 MXU accumulation)
    # => slightly loose tolerance against the all-f32 reference.
    np.testing.assert_allclose(np.asarray(out.astype(jnp.float32)),
                               np.asarray(ref), rtol=3e-2, atol=3e-2)

    print("KERNEL_OK")
</pallas_src>

<mosaic_0001>
module attributes {stable_mosaic.version = 11 : i64} {
  func.func @stats_kernel(%arg0: i32, %arg1: i32, %arg2: memref<48x512xbf16, #tpu.memory_space<vmem>>, %arg3: memref<1x48x512xbf16, #tpu.memory_space<vmem>>, %arg4: memref<8x48xbf16, #tpu.memory_space<vmem>>, %arg5: memref<4x16x48xbf16, #tpu.memory_space<vmem>>, %arg6: memref<1x1x8x8xf32, #tpu.memory_space<vmem>>) attributes {dimension_semantics = [#tpu.dimension_semantics<parallel>, #tpu.dimension_semantics<parallel>], iteration_bounds = array<i64: 1, 4>, scalar_prefetch = 0 : i64, scratch_operands = 0 : i64, tpu.core_type = #tpu.core_type<tc>, window_params = [{transform_indices = @transform_0, window_bounds = array<i64: 48, 512>}, {transform_indices = @transform_1, window_bounds = array<i64: 1, 48, 512>}, {pipeline_mode = #tpu.pipeline_mode<synchronous>, transform_indices = @transform_2, window_bounds = array<i64: 8, 48>}, {pipeline_mode = #tpu.pipeline_mode<synchronous>, transform_indices = @transform_3, window_bounds = array<i64: 4, 16, 48>}, {transform_indices = @transform_4, window_bounds = array<i64: 1, 1, 8, 8>}]} {
    %c0 = arith.constant 0 : index
    %c0_0 = arith.constant 0 : index
    %0 = vector.load %arg2[%c0, %c0_0] : memref<48x512xbf16, #tpu.memory_space<vmem>>, vector<48x512xbf16>
    %c0_1 = arith.constant 0 : index
    %c0_2 = arith.constant 0 : index
    %c0_3 = arith.constant 0 : index
    %1 = vector.load %arg3[%c0_1, %c0_2, %c0_3] : memref<1x48x512xbf16, #tpu.memory_space<vmem>>, vector<1x48x512xbf16>
    %2 = vector.shape_cast %1 : vector<1x48x512xbf16> to vector<48x512xbf16>
    %c0_4 = arith.constant 0 : index
    %c0_5 = arith.constant 0 : index
    %3 = vector.load %arg4[%c0_4, %c0_5] : memref<8x48xbf16, #tpu.memory_space<vmem>>, vector<8x48xbf16>
    %cst = arith.constant dense<0.000000e+00> : vector<8x512xf32>
    %4 = tpu.matmul %3, %2, %cst {dimension_numbers = #tpu.dot_dimension_numbers<[1], [0], [0], [1], [0, 0, 1, 1], [], []>} : vector<8x48xbf16>, vector<48x512xbf16>, vector<8x512xf32> -> vector<8x512xf32>
    %5 = arith.index_cast %arg1 : i32 to index
    %c0_6 = arith.constant 0 : index
    %c0_7 = arith.constant 0 : index
    %6 = vector.load %arg5[%5, %c0_6, %c0_7] : memref<4x16x48xbf16, #tpu.memory_space<vmem>>, vector<1x16x48xbf16>
    %7 = vector.shape_cast %6 : vector<1x16x48xbf16> to vector<16x48xbf16>
    %cst_8 = arith.constant dense<0.000000e+00> : vector<16x512xf32>
    %8 = tpu.matmul %7, %0, %cst_8 {dimension_numbers = #tpu.dot_dimension_numbers<[1], [0], [0], [1], [0, 0, 1, 1], [], []>} : vector<16x48xbf16>, vector<48x512xbf16>, vector<16x512xf32> -> vector<16x512xf32>
    %9 = vector.extract_strided_slice %8 {offsets = [0, 0], sizes = [8, 512], strides = [1, 1]} : vector<16x512xf32> to vector<8x512xf32>
    %10 = vector.extract_strided_slice %8 {offsets = [8, 0], sizes = [8, 512], strides = [1, 1]} : vector<16x512xf32> to vector<8x512xf32>
    %cst_9 = arith.constant dense<0.000000e+00> : vector<8xf32>
    %11 = vector.multi_reduction <add>, %4, %cst_9 [1] : vector<8x512xf32> to vector<8xf32>
    %12 = vector.shape_cast %11 : vector<8xf32> to vector<8x1xf32>
    %13 = arith.mulf %4, %4 : vector<8x512xf32>
    %cst_10 = arith.constant dense<0.000000e+00> : vector<8xf32>
    %14 = vector.multi_reduction <add>, %13, %cst_10 [1] : vector<8x512xf32> to vector<8xf32>
    %15 = vector.shape_cast %14 : vector<8xf32> to vector<8x1xf32>
    %cst_11 = arith.constant dense<0.000000e+00> : vector<8xf32>
    %16 = vector.multi_reduction <add>, %9, %cst_11 [1] : vector<8x512xf32> to vector<8xf32>
    %17 = vector.shape_cast %16 : vector<8xf32> to vector<8x1xf32>
    %18 = arith.mulf %9, %9 : vector<8x512xf32>
    %cst_12 = arith.constant dense<0.000000e+00> : vector<8xf32>
    %19 = vector.multi_reduction <add>, %18, %cst_12 [1] : vector<8x512xf32> to vector<8xf32>
    %20 = vector.shape_cast %19 : vector<8xf32> to vector<8x1xf32>
    %cst_13 = arith.constant dense<0.000000e+00> : vector<8xf32>
    %21 = vector.multi_reduction <add>, %10, %cst_13 [1] : vector<8x512xf32> to vector<8xf32>
    %22 = vector.shape_cast %21 : vector<8xf32> to vector<8x1xf32>
    %23 = arith.mulf %10, %10 : vector<8x512xf32>
    %cst_14 = arith.constant dense<0.000000e+00> : vector<8xf32>
    %24 = vector.multi_reduction <add>, %23, %cst_14 [1] : vector<8x512xf32> to vector<8xf32>
    %25 = vector.shape_cast %24 : vector<8xf32> to vector<8x1xf32>
    %cst_15 = arith.constant 0.000000e+00 : f32
    %26 = vector.broadcast %cst_15 : f32 to vector<8x1xf32>
    %27 = tpu.concatenate %12, %15, %17, %20, %22, %25, %26, %26 in 1 : vector<8x1xf32>, vector<8x1xf32>, vector<8x1xf32>, vector<8x1xf32>, vector<8x1xf32>, vector<8x1xf32>, vector<8x1xf32>, vector<8x1xf32> -> vector<8x8xf32>
    %28 = tpu.transpose %27, [1, 0] : vector<8x8xf32> -> vector<8x8xf32>
    %29 = vector.shape_cast %28 : vector<8x8xf32> to vector<1x1x8x8xf32>
    %c0_16 = arith.constant 0 : index
    %c0_17 = arith.constant 0 : index
    %c0_18 = arith.constant 0 : index
    %c0_19 = arith.constant 0 : index
    %30 = vector.load %arg6[%c0_16, %c0_17, %c0_18, %c0_19] : memref<1x1x8x8xf32, #tpu.memory_space<vmem>>, vector<1x1x8x8xf32>
    tpu.vector_store %arg6[%c0_16, %c0_17, %c0_18, %c0_19], %29 {strides = array<i32>} : memref<1x1x8x8xf32, #tpu.memory_space<vmem>>, vector<1x1x8x8xf32>,
    return
  }
  func.func @transform_0(%arg0: i32, %arg1: i32) -> (i32, i32) {
    %c0_i32 = arith.constant 0 : i32
    %c0_i32_0 = arith.constant 0 : i32
    return %c0_i32, %arg0 : i32, i32
  }
  func.func @transform_1(%arg0: i32, %arg1: i32) -> (i32, i32, i32) {
    %c0_i32 = arith.constant 0 : i32
    %c0_i32_0 = arith.constant 0 : i32
    return %arg1, %c0_i32, %arg0 : i32, i32, i32
  }
  func.func @transform_2(%arg0: i32, %arg1: i32) -> (i32, i32) {
    %c0_i32 = arith.constant 0 : i32
    %c0_i32_0 = arith.constant 0 : i32
    %c0_i32_1 = arith.constant 0 : i32
    return %c0_i32, %c0_i32_0 : i32, i32
  }
  func.func @transform_3(%arg0: i32, %arg1: i32) -> (i32, i32, i32) {
    %c0_i32 = arith.constant 0 : i32
    %c0_i32_0 = arith.constant 0 : i32
    %c0_i32_1 = arith.constant 0 : i32
    %c0_i32_2 = arith.constant 0 : i32
    return %c0_i32, %c0_i32_0, %c0_i32_1 : i32, i32, i32
  }
  func.func @transform_4(%arg0: i32, %arg1: i32) -> (i32, i32, i32, i32) {
    %c0_i32 = arith.constant 0 : i32
    %c0_i32_0 = arith.constant 0 : i32
    %c0_i32_1 = arith.constant 0 : i32
    return %arg1, %arg0, %c0_i32, %c0_i32_0 : i32, i32, i32, i32
  }
}

</mosaic_0001>

<bundles_post_ra>
// kernel: tpu_custom_call.1
= control target key start
LH: loop header
LB: loop body
LE: loop exit
PB: predicated region body
PF: predicated region fallthrough
CT: control target
= control target key end

     0   :  { %s1508_s0 = inlined_call_operand.hbm [shape: bf16[48,512], index: 0, kind: input, shape index: {}]   ;;  %s1509_s1 = inlined_call_operand.hbm [shape: bf16[4,48,512], index: 1, kind: input, shape index: {}]   ;;  %s1510_s2 = inlined_call_operand.hbm [shape: bf16[8,48], index: 2, kind: input, shape index: {}]   ;;  %s1511_s3 = inlined_call_operand.hbm [shape: bf16[4,16,48], index: 3, kind: input, shape index: {}]   ;;  %s1512_s4 = inlined_call_operand.hbm [shape: f32[4,1,8,8], index: 4, kind: output, shape index: {}]  }
   0x1   :  { %1515 = sst [smem:[#allocation16_spill]] %s1508_s0 }
   0x2   :  { %1516 = sst [smem:[#allocation17_spill]] %s1510_s2 }
   0x3   :  { %9 = vsyncpa [#allocation3], 0 }
   0x4   :  { %10 = vsyncpa [#allocation6], 0 }
   0x5   :  { %12 = vsyncpa [#allocation6 + $0x1], 0 }
   0x6   :  { %13 = vsyncpa [#allocation9], 0 }
   0x7   :  { %14 = vsyncpa [#allocation4], 0 }
   0x8   :  { %16 = vsyncpa [#allocation4 + $0x1], 0  ;;  %s1291_s15 = smov 0   ;;  %s1293_s16 = smov 0  }
   0x9   :  { %s1295_s17 = smov 0   ;;  %s1297_s18 = smov 0  }
   0xa   :  { %s1299_s19 = smov 0   ;;  %s1301_s20 = smov 0  }
   0xb LB: > { %s1322_s21 = sadd.s32 4294967295, %s1257_s20   ;;  %s790_s22 = sadd.s32 4294967294, %s1257_s20   ;;  %s1257_s20 = sphi %s1301_s20, %s22_s20   ;;  %s1253_s19 = sphi %s1299_s19, %s1532_s19   ;;  %s1249_s18 = sphi %s1297_s18, %s1531_s18   ;;  %s1245_s17 = sphi %s1295_s17, %s1530_s17   ;;  %s1241_s16 = sphi %s1293_s16, %s1529_s16   ;;  %s1237_s15 = sphi %s1291_s15, %s1528_s15  }
   0xc   : > { %p76_p0 = scmp.ne.s32.totalorder %s1245_s17, %s1241_s16  ;;  %p77_p1 = scmp.eq.s32.totalorder %s1257_s20, 0 }
   0xd   : > { %p82_p2 = scmp.ne.s32.totalorder %s1241_s16, %s1237_s15  ;;  %p83_p3 = scmp.eq.s32.totalorder %s1322_s21, 0 }
   0xe   : > { %p150_p4 = scmp.eq.s32.totalorder %s1322_s21, 3  ;;  %p1332_p5 = por %p77_p1, %p76_p0 }
   0xf   : > { %p156_p6 = scmp.eq.s32.totalorder %s790_s22, 3  ;;  %p1338_p7 = por %p83_p3, %p82_p2 }
  0x10   : > { %p1342_p8 = por %p150_p4, %p76_p0  ;;  %p791_p10 = scmp.ge.s32.totalorder %s1257_s20, 1 }
  0x11   : > { %p1346_p9 = por %p156_p6, %p82_p2  ;;  %p163_p11 = scmp.lt.s32.totalorder %s1257_s20, 5 }
  0x12   : > { %s1521_s2 = sld [smem:[#allocation17_spill]]  ;;  %s1259_s5 = smov [#allocation7]  }
  0x13   : > { %p1355_p12 = pnand %p791_p10, %p163_p11  ;;  %s194_s6 = sshll.u32 %s1259_s5, 4  ;;  %s195_s6 = int_to_ptr.vmem [resolvable:$true] %s194_s6 }
  0x14   : > { %p982_p0 = scmp.lt.s32.totalorder %s1257_s20, 4  ;;  %s1525_s0 = sld [smem:[#allocation16_spill]] }
  0x15   : > { %p961_p13 = pneg %p1355_p12  ;;  %s1260_s12 = smov [#allocation2]  }
  0x16   : > { %p1370_p2 = pnand %p982_p0, %p1332_p5  ;;  %s179_s13 = sshll.u32 %s1260_s12, 4  ;;  %s180_s13 = int_to_ptr.vmem [resolvable:$true] %s179_s13 }
  0x17   : > { %p1364_p1 = pnand %p961_p13, %p83_p3  ;;  %s1513_s14 = smov 256  }
  0x18   : > { %s192_s29 = sshll.u32 %s1521_s2, 4  ;;  %s1514_s22 = smov 16   ;;  %s193_s29 = int_to_ptr.hbm [resolvable:$true] %s192_s29 }
  0x19   : > { %967 = dma.hbm_to_vmem [thread:$0]  (!%p1364_p1), %s193_s29, 64, %s195_s6, [#allocation6]  }
  0x1a   : > { %s177_s11 = sshll.u32 %s1525_s0, 4  ;;  %s203_s28 = sshll.u32 %s1511_s3, 4  ;;  %s178_s11 = int_to_ptr.hbm [resolvable:$true] %s177_s11  ;;  %s204_s28 = int_to_ptr.hbm [resolvable:$true] %s203_s28 }
  0x1b   : > { %964 = dma.hbm_to_vmem [thread:$0]  (!%p1364_p1), %s178_s11, 1536, %s180_s13, [#allocation3], %s1513_s14, %s1513_s14, %s1514_s22  }
  0x1c   : > { %s1263_s29 = smov [#allocation8]   ;;  %s1264_s6 = smov 64  }
  0x1d   : > { %s205_s5 = sshll.u32 %s1263_s29, 4  ;;  %s1265_s9 = smov 4   ;;  %s206_s5 = int_to_ptr.vmem [resolvable:$true] %s205_s5 }
  0x1e   : > { %970 = dma.hbm_to_vmem [thread:$0]  (!%p1364_p1), %s204_s28, 512, %s206_s5, [#allocation9], %s1264_s6, %s1264_s6, %s1265_s9  }
  0x1f   : > { %s219_s10 = sand.u32 1, %s1257_s20   ;;  %s69_s12 = sadd.s32 1, %s1245_s17 }
  0x20   : > { %s31_s0 = sadd.s32 1, %s1253_s19  ;;  %s221_s11 = sand.u32 1, %s1245_s17  }
  0x21   : > { %p32_p4 = scmp.ge.s32.totalorder %s31_s0, 4  ;;  %s942_s13 = smul.u32 96, %s221_s11 }
  0x22   : > { %s943_s23 = smul.u32 96, %s1253_s19  ;;  %s220_s6 = scalar_lea.sflag [#allocation6], %s219_s10 }
  0x23   : > { %s1534_s0 = smov (%p32_p4, %s31_s0), 0  ;;  %s223_s14 = scalar_lea.vmem [#allocation5], %s942_s13 }
  0x24   : > { %s64_s27 = ssub.s32 %s1253_s19, %s1534_s0  ;;  %s233_s29 = sshll.u32 %s223_s14, 4  ;;  %s234_s29 = int_to_ptr.vmem [resolvable:$true] %s233_s29 }
  0x25   : > { %p67_p5 = scmp.eq.s32.totalorder %s64_s27, 0  ;;  %s230_s7 = scalar_lea.hbm %s1509_s1, %s943_s23 }
  0x26   : > { %s231_s28 = sshll.u32 %s230_s7, 4  ;;  %s1526_s9 = smov 16   ;;  %s232_s28 = int_to_ptr.hbm [resolvable:$true] %s231_s28 }
  0x27   : > { %s1402_s5 = scalar_select %p67_p5, %s1245_s17, %s69_s12  }
  0x28   : > { %s1527_s11 = smov 256   ;;  %245 = sbr.rel (%p1355_p12) target bundleno = 526 (0x20e), region = 36 }
  0x29   : > { %974 = dma.hbm_to_vmem [thread:$0]  (!%p1370_p2), %s232_s28, 1536, %s234_s29, %s220_s6, %s1527_s11, %s1527_s11, %s1526_s9  }
  0x2d   : > { %1216 = dma.done.wait (%p83_p3), [#allocation3], 1536  }
  0x2e   : > { %1218 = vsyncadd (%p83_p3), [#allocation3], 4294965760  ;;  %s252_s2 = sand.u32 1, %s1322_s21   ;;  %s1417_s14 = sand.u32 1, %s1241_s16  }
  0x2f   : > { %s944_s8 = smul.u32 96, %s1417_s14  ;;  %s253_s22 = scalar_lea.sflag [#allocation6], %s252_s2 }
  0x31   : > { %s1420_s10 = scalar_lea.vmem [#allocation5], %s944_s8 }
  0x32   : > { %1220 = dma.done.wait (%p1338_p7), %s253_s22, 1536  }
  0x33   : > { %1222 = vsyncadd (%p1338_p7), %s253_s22, 4294965760 }
  0x34   : > { %1224 = dma.done.wait (%p83_p3), [#allocation6], 64  }
  0x35   : > { %1226 = vsyncadd (%p83_p3), [#allocation6], 4294967232 }
  0x36   : > { %1228 = dma.done.wait (%p83_p3), [#allocation9], 512  }
  0x37   : > { %1230 = vsyncadd (%p83_p3), [#allocation9], 4294966784  ;;  %v836_v0 = vld [vmem:[%s1420_s10 + $0x40] sm:$0xf]  ;;  %v938_v1 = vld [vmem:[%s1420_s10 + $0x4c] sm:$0xf0] }
  0x38   : > { %v936_v2 = vld [vmem:[%s1420_s10 + $0x44] sm:$0xf]  ;;  %v837_v3 = vor.u32 %v938_v1, %v836_v0  ;;  %v838_v4 = vld [vmem:[%s1420_s10 + $0x50] sm:$0xf0]  ;;  %v844_v5 = vld [vmem:[%s1420_s10 + $0x48] sm:$0xf] }
  0x39   : > { %v939_v6 = vld [vmem:[%s1420_s10 + $0x54] sm:$0xf0]  ;;  %v841_v7 = vor.u32 %v936_v2, %v838_v4  ;;  %v937_v9 = vld [vmem:[%s1420_s10 + $0x4c] sm:$0xf]  ;;  %v846_v10 = vld [vmem:[%s1420_s10 + $0x58] sm:$0xf0] }
  0x3a   : > { %v845_v8 = vor.u32 %v939_v6, %v844_v5  ;;  %v820_v11 = vld [vmem:[%s1420_s10 + $0x20] sm:$0xf]  ;;  %389 = vmatpush.bf16.msra.mxu0 %v837_v3  ;;  %v849_v12 = vor.u32 %v937_v9, %v846_v10  ;;  %v934_v13 = vld [vmem:[%s1420_s10 + $0x2c] sm:$0xf0]  ;;  %v932_v14 = vld [vmem:[%s1420_s10 + $0x24] sm:$0xf] }
  0x3b   : > { %v822_v15 = vld [vmem:[%s1420_s10 + $0x30] sm:$0xf0]  ;;  %402 = vmatpush.bf16.msra.mxu1 %v841_v7  ;;  %v821_v16 = vor.u32 %v934_v13, %v820_v11  ;;  %v828_v18 = vld [vmem:[%s1420_s10 + $0x28] sm:$0xf]  ;;  %v935_v19 = vld [vmem:[%s1420_s10 + $0x34] sm:$0xf0] }
  0x3c   : > { %415 = vmatpush.bf16.msra.mxu2 %v845_v8  ;;  %v825_v17 = vor.u32 %v932_v14, %v822_v15  ;;  %v933_v20 = vld [vmem:[%s1420_s10 + $0x2c] sm:$0xf]  ;;  %428 = vmatpush.bf16.msra.mxu3 %v849_v12  ;;  %v829_v21 = vor.u32 %v935_v19, %v828_v18  ;;  %v830_v22 = vld [vmem:[%s1420_s10 + $0x38] sm:$0xf0]  ;;  %v804_v23 = vld [vmem:[%s1420_s10] sm:$0xf] }
  0x3d   : > { %v930_v24 = vld [vmem:[%s1420_s10 + $0xc] sm:$0xf0]  ;;  %v833_v25 = vor.u32 %v933_v20, %v830_v22  ;;  %v928_v26 = vld [vmem:[%s1420_s10 + $0x4] sm:$0xf]  ;;  %v806_v27 = vld [vmem:[%s1420_s10 + $0x10] sm:$0xf0] }
  0x3e   : > { %v812_v28 = vld [vmem:[%s1420_s10 + $0x8] sm:$0xf]  ;;  %390 = vmatpush.bf16.msra.mxu0 %v821_v16  ;;  %v805_v29 = vor.u32 %v930_v24, %v804_v23  ;;  %v931_v30 = vld [vmem:[%s1420_s10 + $0x14] sm:$0xf0]  ;;  %v929_v31 = vld [vmem:[%s1420_s10 + $0xc] sm:$0xf]  ;;  %v809_v33 = vor.u32 %v928_v26, %v806_v27 }
  0x3f   : > { %v814_v32 = vld [vmem:[%s1420_s10 + $0x18] sm:$0xf0]  ;;  %403 = vmatpush.bf16.msra.mxu1 %v825_v17  ;;  %v813_v34 = vor.u32 %v931_v30, %v812_v28  ;;  %vm380_vm0 = vcmask 392192   ;;  %v902_v35 = vld [vmem:[#allocation2 + $0x48] sm:$0xf]  ;;  %s940_s21 = sshll.u32 %s1249_s18, 3 }
  0x40   : > { %416 = vmatpush.bf16.msra.mxu2 %v829_v21  ;;  %v927_v36 = vld [vmem:[#allocation2 + $0x54] sm:$0xf0]  ;;  %429 = vmatpush.bf16.msra.mxu3 %v833_v25  ;;  %v817_v37 = vor.u32 %v929_v31, %v814_v32  ;;  %v319_v38 = vld [vmem:[#allocation7] sm:$0xf]  ;;  %v925_v40 = vld [vmem:[#allocation2 + $0x4c] sm:$0xf]  ;;  %s667_s23 = scalar_lea.hbm %s1512_s4, %s940_s21 }
  0x41   : > { %v903_v39 = vor.u32 %v927_v36, %v902_v35  ;;  %v904_v41 = vld [vmem:[#allocation2 + $0x58] sm:$0xf0]  ;;  %v894_v42 = vld [vmem:[#allocation2 + $0x40] sm:$0xf]  ;;  %v926_v44 = vld [vmem:[#allocation2 + $0x4c] sm:$0xf0] }
  0x42   : > { %v907_v43 = vor.u32 %v925_v40, %v904_v41  ;;  %v924_v45 = vld [vmem:[#allocation2 + $0x44] sm:$0xf]  ;;  %v896_v46 = vld [vmem:[#allocation2 + $0x50] sm:$0xf0]  ;;  %391 = vmatpush.bf16.msra.mxu0 %v805_v29  ;;  %v886_v47 = vld [vmem:[#allocation2 + $0x28] sm:$0xf]  ;;  %v895_v50 = vor.u32 %v926_v44, %v894_v42 }
  0x43   : > { %v923_v48 = vld [vmem:[#allocation2 + $0x34] sm:$0xf0]  ;;  %v921_v49 = vld [vmem:[#allocation2 + $0x2c] sm:$0xf]  ;;  %404 = vmatpush.bf16.msra.mxu1 %v809_v33  ;;  %v888_v51 = vld [vmem:[#allocation2 + $0x38] sm:$0xf0]  ;;  %v899_v52 = vor.u32 %v924_v45, %v896_v46 }
  0x44   : > { %417 = vmatpush.bf16.msra.mxu2 %v813_v34  ;;  %430 = vmatpush.bf16.msra.mxu3 %v817_v37  ;;  %v887_v53 = vor.u32 %v923_v48, %v886_v47  ;;  %v878_v54 = vld [vmem:[#allocation2 + $0x20] sm:$0xf]  ;;  %v922_v55 = vld [vmem:[#allocation2 + $0x2c] sm:$0xf0]  ;;  %v920_v56 = vld [vmem:[#allocation2 + $0x24] sm:$0xf]  ;;  %v891_v57 = vor.u32 %v921_v49, %v888_v51 }
  0x45   : > { %850 = vmatmul.msk.bf16.vlgmr.msra.gmra.mxu0 %vm380_vm0, %v319_v38  ;;  %v880_v58 = vld [vmem:[#allocation2 + $0x30] sm:$0xf0]  ;;  %v870_v59 = vld [vmem:[#allocation2 + $0x8] sm:$0xf]  ;;  %v919_v60 = vld [vmem:[#allocation2 + $0x14] sm:$0xf0]  ;;  %v879_v62 = vor.u32 %v922_v55, %v878_v54 }
  0x46   : > { %851 = vmatmul.msk.bf16.vlgmr.msra.gmra.mxu1 %vm380_vm0, %v319_v38  ;;  %v917_v61 = vld [vmem:[#allocation2 + $0xc] sm:$0xf]  ;;  %514 = vmatpush.bf16.msrb.mxu0 %v895_v50  ;;  %v872_v63 = vld [vmem:[#allocation2 + $0x18] sm:$0xf0]  ;;  %v883_v0 = vor.u32 %v920_v56, %v880_v58  ;;  %v871_v1 = vor.u32 %v919_v60, %v870_v59  ;;  %v862_v2 = vld [vmem:[#allocation2] sm:$0xf] }
  0x47   : > { %852 = vmatmul.msk.bf16.vlgmr.msra.gmra.mxu2 %vm380_vm0, %v319_v38  ;;  %853 = vmatmul.msk.bf16.vlgmr.msra.gmra.mxu3 %vm380_vm0, %v319_v38  ;;  %v918_v3 = vld [vmem:[#allocation2 + $0xc] sm:$0xf0]  ;;  %v916_v4 = vld [vmem:[#allocation2 + $0x4] sm:$0xf]  ;;  %v864_v5 = vld [vmem:[#allocation2 + $0x10] sm:$0xf0]  ;;  %v875_v6 = vor.u32 %v917_v61, %v872_v63 }
  0x48   : > { %542 = vmatpush.bf16.msrb.mxu2 %v903_v39  ;;  %556 = vmatpush.bf16.msrb.mxu3 %v907_v43  ;;  %v863_v7 = vor.u32 %v918_v3, %v862_v2  ;;  %v867_v8 = vor.u32 %v916_v4, %v864_v5  ;;  %s438_s24 = scalar_lea.vmem [#allocation8], %s940_s21  ;;  %vm607_vm1 = vcmask 7168   ;;  %vm609_vm2 = vcmask 15360   ;;  %s801_s30 = sshll.u32 %s1417_s14, 3 }
  0x49   : > { %528 = vmatpush.bf16.msrb.mxu1 %v899_v52  ;;  %v941_v9 = vld [vmem:[%s438_s24] sm:$0xff]  ;;  %vm611_vm3 = vcmask 23552   ;;  %vm613_vm4 = vcmask 31744   ;;  %vm615_vm5 = vcmask 39936   ;;  %vm617_vm6 = vcmask 48128   ;;  %s291_s27 = scalar_lea.vmem [#allocation10], %s801_s30 }
  0x4a   : > { %515 = vmatpush.bf16.msrb.mxu0 %v879_v62  ;;  %vm619_vm7 = vcmask 56320   ;;  %s669_s29 = sshll.u32 %s291_s27, 4  ;;  %s671_s7 = sshll.u32 %s667_s23, 4  ;;  %vm653_vm8 = vcmask 64512   ;;  %s670_s29 = int_to_ptr.vmem [resolvable:$true] %s669_s29  ;;  %s672_s7 = int_to_ptr.hbm [resolvable:$true] %s671_s7 }
  0x4b   : > { %s656_s28 = scalar_lea.sflag [#allocation4], %s1417_s14  ;;  %s1177_s6 = sshra.s32 %s672_s7, 4  ;;  %s1178_s6 = int_to_ptr.hbm [resolvable:$true] %s1177_s6 }
  0x4c   : > { %543 = vmatpush.bf16.msrb.mxu2 %v887_v53  ;;  %557 = vmatpush.bf16.msrb.mxu3 %v891_v57  ;;  %s1179_s9 = scalar_lea.hbm %s1178_s6, 8  ;;  %s1183_s2 = scalar_lea.hbm %s1512_s4, 32 }
  0x4d   : > { %529 = vmatpush.bf16.msrb.mxu1 %v883_v0  ;;  %p1180_p3 = scmp.ne.s32.totalorder %s1178_s6, %s1179_s9  ;;  %p1184_p10 = scmp.lt.s32.totalorder %s1178_s6, %s1512_s4 }
  0x4e   : > { %516 = vmatpush.bf16.msrb.mxu0 %v863_v7  ;;  %p1185_p11 = scmp.lt.s32.totalorder %s1183_s2, %s1179_s9 }
  0x4f   : > { %p1181_p6 = pnand %p1180_p3, %p1342_p8 }
  0x50   : > { %544 = vmatpush.bf16.msrb.mxu2 %v871_v1  ;;  %558 = vmatpush.bf16.msrb.mxu3 %v875_v6  ;;  %p1186_p12 = por %p1185_p11, %p1184_p10 }
  0x51   : > { %530 = vmatpush.bf16.msrb.mxu1 %v867_v8  ;;  %p1182_p7 = pneg %p1181_p6 }
  0x53   : > { %p1187_p13 = pnand %p1186_p12, %p1182_p7 }
  0x55   : > { %908 = vmatmul.msk.bf16.vlgmr.msrb.gmra.mxu0 %vm380_vm0, %v941_v9 }
  0x56   : > { %909 = vmatmul.msk.bf16.vlgmr.msrb.gmra.mxu1 %vm380_vm0, %v941_v9 }
  0x57   : > { %910 = vmatmul.msk.bf16.vlgmr.msrb.gmra.mxu2 %vm380_vm0, %v941_v9  ;;  %911 = vmatmul.msk.bf16.vlgmr.msrb.gmra.mxu3 %vm380_vm0, %v941_v9 }
  0xc2   : > { %v393_v10 = vpop.f32.mrf.mxu0 }
  0xc3   : > { %v406_v11 = vpop.f32.mrf.mxu1  ;;  %v570_v13 = vmul.f32 %v393_v10, %v393_v10 }
  0xc4   : > { %v565_v12 = vadd.f32 %v406_v11, %v393_v10  ;;  %v571_v14 = vmul.f32 %v406_v11, %v406_v11 }
  0xc6   : > { %v574_v20 = vadd.f32 %v571_v14, %v570_v13 }
  0xca   : > { %v419_v15 = vpop.f32.mrf.mxu2  ;;  %v432_v17 = vpop.f32.mrf.mxu3 }
  0xcb   : > { %v566_v16 = vadd.f32 %v565_v12, %v419_v15  ;;  %v395_v18 = vpop.f32.mrf.mxu0  ;;  %v408_v19 = vpop.f32.mrf.mxu1  ;;  %v572_v21 = vmul.f32 %v419_v15, %v419_v15  ;;  %v573_v23 = vmul.f32 %v432_v17, %v432_v17 }
  0xcd   : > { %v567_v22 = vadd.f32 %v566_v16, %v432_v17  ;;  %v575_v24 = vadd.f32 %v574_v20, %v572_v21 }
  0xcf   : > { %568 = vadd.xlane.f32.xlu0 %v567_v22  ;;  %v576_v29 = vadd.f32 %v575_v24, %v573_v23 }
  0xd2   : > { %v421_v25 = vpop.f32.mrf.mxu2  ;;  %v434_v26 = vpop.f32.mrf.mxu3 }
  0xd3   : > { %v518_v27 = vpop.f32.mrf.mxu0  ;;  %v532_v28 = vpop.f32.mrf.mxu1 }
  0xd4   : > { %v579_v30 = vadd.f32 %v532_v28, %v518_v27  ;;  %v584_v31 = vmul.f32 %v518_v27, %v518_v27  ;;  %v585_v32 = vmul.f32 %v532_v28, %v532_v28 }
  0xd6   : > { %v588_v36 = vadd.f32 %v585_v32, %v584_v31 }
  0xd7   : > { %577 = vadd.xlane.f32.xlu0 %v576_v29 }
  0xda   : > { %v546_v33 = vpop.f32.mrf.mxu2  ;;  %v560_v35 = vpop.f32.mrf.mxu3 }
  0xdb   : > { %v580_v34 = vadd.f32 %v579_v30, %v546_v33  ;;  %v586_v37 = vmul.f32 %v546_v33, %v546_v33  ;;  %v520_v39 = vpop.f32.mrf.mxu0  ;;  %v534_v40 = vpop.f32.mrf.mxu1  ;;  %v587_v41 = vmul.f32 %v560_v35, %v560_v35 }
  0xdc   : > { %v593_v42 = vadd.f32 %v534_v40, %v520_v39  ;;  %v598_v45 = vmul.f32 %v520_v39, %v520_v39  ;;  %v599_v46 = vmul.f32 %v534_v40, %v534_v40 }
  0xdd   : > { %v581_v38 = vadd.f32 %v580_v34, %v560_v35  ;;  %v589_v43 = vadd.f32 %v588_v36, %v586_v37 }
  0xde   : > { %v602_v52 = vadd.f32 %v599_v46, %v598_v45 }
  0xdf   : > { %582 = vadd.xlane.f32.xlu1 %v581_v38  ;;  %v590_v50 = vadd.f32 %v589_v43, %v587_v41 }
  0xe2   : > { %v548_v44 = vpop.f32.mrf.mxu2  ;;  %v562_v48 = vpop.f32.mrf.mxu3 }
  0xe3   : > { %v594_v47 = vadd.f32 %v593_v42, %v548_v44  ;;  %v600_v49 = vmul.f32 %v548_v44, %v548_v44  ;;  %v601_v54 = vmul.f32 %v562_v48, %v562_v48 }
  0xe5   : > { %v595_v51 = vadd.f32 %v594_v47, %v562_v48  ;;  %v603_v53 = vadd.f32 %v602_v52, %v600_v49 }
  0xe7   : > { %591 = vadd.xlane.f32.xlu1 %v590_v50  ;;  %596 = vadd.xlane.f32.xlu2 %v595_v51  ;;  %v604_v55 = vadd.f32 %v603_v53, %v601_v54 }
  0xef   : > { %605 = vadd.xlane.f32.xlu2 %v604_v55 }
 0x142   : > { %v569_v56 = vpop.xlane.xlu0 %568 }
 0x14a   : > { %v578_v58 = vpop.xlane.xlu0 %577 }
 0x14b   : > { %v608_v61 = vsel %vm607_vm1, %v569_v56, %v578_v58 }
 0x152   : > { %v583_v57 = vpop.xlane.xlu1 %582 }
 0x153   : > { %v610_v62 = vsel %vm609_vm2, %v608_v61, %v583_v57 }
 0x15a   : > { %v597_v59 = vpop.xlane.xlu2 %596  ;;  %v592_v60 = vpop.xlane.xlu1 %591 }
 0x15b   : > { %v612_v63 = vsel %vm611_vm3, %v610_v62, %v592_v60 }
 0x15c   : > { %v614_v0 = vsel %vm613_vm4, %v612_v63, %v597_v59 }
 0x162   : > { %v606_v1 = vpop.xlane.xlu2 %605 }
 0x163   : > { %v616_v2 = vsel %vm615_vm5, %v614_v0, %v606_v1 }
 0x164   : > { %v618_v3 = vsel %vm617_vm6, %v616_v2, 0.0 }
 0x165   : > { %v620_v4 = vsel %vm619_vm7, %v618_v3, 0.0 }
 0x166   : > { %621 = vxpose.xlu0.b32.start.end [1/1] (short) (narrow) %v620_v4, 8 }
 0x20a   : > { %v637_v5 = vpop.trf.xlu0 }
 0x20b   : > { %654 = vst.msk [vmem:[%s291_s27] sm:$0xff] %vm653_vm8, %v637_v5 }
 0x20c   : > { %1190 = shalt.err (!%p1187_p13)
}
 0x20d   : > { %959 = dma.vmem_to_hbm [thread:$0]  (%p1342_p8), %s670_s29, 128, %s672_s7, %s656_s28  }
 0x20e PF: > { %p986_p0 = scmp.ge.s32.totalorder %s1257_s20, 2  ;;  %s683_s14 = sand.u32 1, %s1237_s15  }
 0x20f   : > { %s684_s10 = scalar_lea.sflag [#allocation4], %s683_s14 }
 0x210   : > { %p976_p1 = pnand %p986_p0, %p1346_p9 }
 0x212   : > { %p977_p2 = pneg %p976_p1 }
 0x214   : > { %1232 = dma.done.wait (%p977_p2), %s684_s10, 128  }
 0x215   : > { %1234 = vsyncadd (%p977_p2), %s684_s10, 4294967168  ;;  %s22_s20 = sadd.s32 1, %s1257_s20   ;;  %s1528_s15 = smov %s1241_s16 }
 0x216   : > { %p19_p4 = scmp.ge.s32.totalorder %s22_s20, 6   ;;  %s1529_s16 = smov %s1245_s17 }
 0x217   : > { %s1530_s17 = smov %s1402_s5  ;;  %s1531_s18 = smov %s1253_s19 }
 0x218   : > { %s1532_s19 = smov %s1534_s0  ;;  %21 = sbr.rel (!%p19_p4) target bundleno = 11 (0xb), region = 96 }
 0x21d   :  { %690 = vsyncpa [#allocation3], 1 }
 0x21e   :  { %692 = vsyncpa [#allocation3 + $0x1], 1 }
 0x21f   :  { %693 = vsyncpa [#allocation6], 1 }
 0x220   :  { %695 = vsyncpa [#allocation6 + $0x1], 1 }
 0x221   :  { %696 = vsyncpa [#allocation9], 1 }
 0x222   :  { %697 = vsyncpa [#allocation4], 1 }
 0x223   :  { %699 = vsyncpa [#allocation4 + $0x1], 1 }

</bundles_post_ra>
